<compile_context>
chip_gen: v6e
topology: v6e:2x2x1
jax: 0.10.0
libtpu: 0.0.40
codegen_flags: <defaults>
</compile_context>

<pallas_src>
import jax
import jax.numpy as jnp
from jax.experimental import pallas as pl
from jax.experimental.pallas import tpu as pltpu

EPS = 1e-5
NEG_SLOPE = 0.2
_MAX_TILE_HW = 2048            # lane-dense spatial tile (multiple of 128)
_VMEM_LIMIT = 32 * 1024 * 1024  # explicit scoped-VMEM limit (v5e/v6e/v7x safe)


def _round_up(a, b):
    return (a + b - 1) // b * b


# ---------------------------------------------------------------------------
# Pass 1: input-side moments.  Per (image, parallel-split) accumulate
#   G  = sum over spatial of x x^T   (Cin x Cin, MXU, contract lane dim)
#   sx = sum over spatial of x       (Cin x 1)
# Padded (zero) spatial columns contribute nothing to either.
# ---------------------------------------------------------------------------
def _moments_kernel(x_ref, g_ref, s_ref):
    t = pl.program_id(2)

    @pl.when(t == 0)
    def _():
        g_ref[...] = jnp.zeros_like(g_ref)
        s_ref[...] = jnp.zeros_like(s_ref)

    xt = x_ref[0]                                     # (Cin, TILE) bf16
    # Contract the lane (spatial) dim of both operands -> (Cin, Cin) in f32.
    g = jax.lax.dot_general(xt, xt, (((1,), (1,)), ((), ())),
                            preferred_element_type=jnp.float32)
    s = jnp.sum(xt.astype(jnp.float32), axis=1, keepdims=True)   # (Cin, 1)
    g_ref[...] += g[None, None]
    s_ref[...] += s[None, None]


# ---------------------------------------------------------------------------
# Pass 2: fused sub-pixel conv (single bf16 MXU matmul) + InstanceNorm
# (precomputed per-row mean / rsqrt) + LeakyReLU, lane-dense output slab.
# ---------------------------------------------------------------------------
def _norm_kernel(x_ref, wt_ref, p_ref, o_ref):
    # x_ref: (1, Cin, TILE) bf16; wt_ref: (C4, Cin) bf16 (resident)
    # p_ref: (1, C4, 2) f32 per-row [mean, rsqrt(var+eps)]
    # o_ref: (1, C4, TILE) f32
    y = jnp.dot(wt_ref[...], x_ref[0],
                preferred_element_type=jnp.float32)   # (C4, TILE)
    mean = p_ref[0, :, 0:1]                           # (C4, 1)
    scale = p_ref[0, :, 1:2]                          # (C4, 1)
    z = (y - mean) * scale
    z = jnp.maximum(z, NEG_SLOPE * z)                 # LeakyReLU(0.2)
    o_ref[...] = z[None].astype(o_ref.dtype)


def transpose_conv_block(x_nchw, w):
    """x_nchw: (N, Cin, H, W) f32; w: (Cin, Cout, 2, 2) f32 (PyTorch layout).

    Returns (N, Cout, 2H, 2W) f32 matching ConvTranspose2d(k=2, s=2, no bias)
    -> InstanceNorm2d -> LeakyReLU(0.2), with bf16 matmul operands.
    """
    N, Cin, H, W = x_nchw.shape
    Cout = w.shape[1]
    HW = H * W
    C4 = 4 * Cout

    tile = min(_round_up(HW, 128), _MAX_TILE_HW)
    hw_p = _round_up(HW, tile)
    n_t = hw_p // tile
    # Parallel split of the pass-1 tile axis (keeps both v7x cores busy at N=1).
    P = 2 if n_t % 2 == 0 else 1
    n_per = n_t // P

    # ---- layout glue (plain JAX, small tensors): spatial-on-lanes bf16 -------
    x_flat = x_nchw.reshape(N, Cin, HW).astype(jnp.bfloat16)
    if hw_p != HW:
        x_flat = jnp.pad(x_flat, ((0, 0), (0, 0), (0, hw_p - HW)))
    # Fused sub-pixel weight, rows r = (di*2 + dj)*Cout + c, bf16.
    wt_bf16 = jnp.transpose(w, (2, 3, 1, 0)).reshape(C4, Cin).astype(jnp.bfloat16)

    # ---- pass 1: per-image input moments (Gram + sum) ------------------------
    x_spec1 = pl.BlockSpec((1, Cin, tile), lambda n, p, t: (n, 0, p * n_per + t))
    g_out, s_out = pl.pallas_call(
        _moments_kernel,
        out_shape=(jax.ShapeDtypeStruct((N, P, Cin, Cin), jnp.float32),
                   jax.ShapeDtypeStruct((N, P, Cin, 1), jnp.float32)),
        grid_spec=pltpu.PrefetchScalarGridSpec(
            num_scalar_prefetch=0,
            grid=(N, P, n_per),
            in_specs=[x_spec1],
            out_specs=[pl.BlockSpec((1, 1, Cin, Cin), lambda n, p, t: (n, p, 0, 0)),
                       pl.BlockSpec((1, 1, Cin, 1), lambda n, p, t: (n, p, 0, 0))],
        ),
        compiler_params=pltpu.CompilerParams(
            dimension_semantics=("parallel", "parallel", "arbitrary"),
            vmem_limit_bytes=_VMEM_LIMIT),
        cost_estimate=pl.CostEstimate(
            flops=2 * N * Cin * Cin * hw_p + 2 * N * Cin * hw_p,
            transcendentals=0,
            bytes_accessed=2 * N * Cin * hw_p + 4 * N * P * Cin * (Cin + 1)),
    )(x_flat)

    # ---- tiny glue: derive per-output-channel mean / rsqrt from the moments --
    g = g_out.sum(axis=1)                              # (N, Cin, Cin)
    sx = s_out.sum(axis=1)[..., 0]                     # (N, Cin)
    wt32 = wt_bf16.astype(jnp.float32)                 # bf16-rounded, f32 math
    count = 4.0 * HW
    s1 = jnp.einsum("rc,nc->nr", wt32, sx)             # (N, C4) sum of y
    s2 = jnp.einsum("rc,ncd,rd->nr", wt32, g, wt32)    # (N, C4) sum of y^2
    mean_c = s1.reshape(N, 4, Cout).sum(axis=1) / count
    ex2_c = s2.reshape(N, 4, Cout).sum(axis=1) / count
    var_c = jnp.maximum(ex2_c - mean_c * mean_c, 0.0)  # guard cancellation
    scale_c = jax.lax.rsqrt(var_c + EPS)
    params = jnp.stack(
        [jnp.tile(mean_c, (1, 4)), jnp.tile(scale_c, (1, 4))], axis=2)  # (N,C4,2)

    # ---- pass 2: conv + normalize + LeakyReLU, lane-dense stores -------------
    out_p = pl.pallas_call(
        _norm_kernel,
        out_shape=jax.ShapeDtypeStruct((N, C4, hw_p), jnp.float32),
        grid_spec=pltpu.PrefetchScalarGridSpec(
            num_scalar_prefetch=0,
            grid=(N, n_t),
            in_specs=[pl.BlockSpec((1, Cin, tile), lambda n, t: (n, 0, t)),
                      pl.BlockSpec((C4, Cin), lambda n, t: (0, 0)),
                      pl.BlockSpec((1, C4, 2), lambda n, t: (n, 0, 0))],
            out_specs=pl.BlockSpec((1, C4, tile), lambda n, t: (n, 0, t)),
        ),
        compiler_params=pltpu.CompilerParams(
            dimension_semantics=("parallel", "parallel"),
            vmem_limit_bytes=_VMEM_LIMIT),
        cost_estimate=pl.CostEstimate(
            flops=2 * N * C4 * Cin * hw_p + 4 * N * C4 * hw_p,
            transcendentals=0,
            bytes_accessed=(2 * N * Cin * hw_p + 2 * C4 * Cin
                            + 4 * N * C4 * 2 + 4 * N * C4 * hw_p)),
    )(x_flat, wt_bf16, params)

    # ---- de-interleave glue back to NCHW (N, Cout, 2H, 2W) -------------------
    y = out_p[:, :, :HW].reshape(N, 2, 2, Cout, H, W)   # (n, di, dj, c, i, j)
    y = jnp.transpose(y, (0, 3, 4, 1, 5, 2))            # (n, c, i, di, j, dj)
    return y.reshape(N, Cout, 2 * H, 2 * W)


def _reference(x_nchw, w):
    """Pure-JAX f32 reference of the PyTorch forward pass."""
    N, Cin, H, W = x_nchw.shape
    Cout = w.shape[1]
    y = jnp.einsum("ncij,cokl->noikjl", x_nchw, w)   # (N, Cout, H, 2, W, 2)
    y = y.reshape(N, Cout, 2 * H, 2 * W)
    mean = y.mean(axis=(2, 3), keepdims=True)
    var = ((y - mean) ** 2).mean(axis=(2, 3), keepdims=True)
    z = (y - mean) / jnp.sqrt(var + EPS)
    return jnp.where(z >= 0, z, NEG_SLOPE * z)


if __name__ == "__main__":
    N, Cin, Cout, H, W = 2, 4, 8, 16, 16

    key = jax.random.PRNGKey(0)
    kx, kw = jax.random.split(key)
    x = jax.random.normal(kx, (N, Cin, H, W), dtype=jnp.float32)
    # ConvTranspose2d weight shape in PyTorch: (in_chans, out_chans, kH, kW)
    w = jax.random.normal(kw, (Cin, Cout, 2, 2), dtype=jnp.float32) * 0.1

    out = transpose_conv_block(x, w)
    out = jax.block_until_ready(out)

    # Reference uses the same bf16-rounded operands the kernel consumes, so the
    # comparison isolates kernel correctness from the (intended) bf16 cast.
    xr = x.astype(jnp.bfloat16).astype(jnp.float32)
    wr = w.astype(jnp.bfloat16).astype(jnp.float32)
    ref = _reference(xr, wr)

    assert out.shape == (N, Cout, 2 * H, 2 * W), out.shape
    err = float(jnp.max(jnp.abs(out - ref)))
    assert jnp.allclose(out, ref, atol=1e-2, rtol=1e-2), err
    print("KERNEL_OK")
</pallas_src>

<mosaic_0001>
module attributes {stable_mosaic.version = 11 : i64} {
  func.func @_moments_kernel(%arg0: i32, %arg1: i32, %arg2: i32, %arg3: memref<1x4x256xbf16, #tpu.memory_space<vmem>>, %arg4: memref<1x1x4x4xf32, #tpu.memory_space<vmem>>, %arg5: memref<1x1x4x1xf32, #tpu.memory_space<vmem>>) attributes {dimension_semantics = [#tpu.dimension_semantics<parallel>, #tpu.dimension_semantics<parallel>, #tpu.dimension_semantics<arbitrary>], iteration_bounds = array<i64: 2, 1, 1>, scalar_prefetch = 0 : i64, scratch_operands = 0 : i64, tpu.core_type = #tpu.core_type<tc>, window_params = [{transform_indices = @transform_0, window_bounds = array<i64: 1, 4, 256>}, {transform_indices = @transform_1, window_bounds = array<i64: 1, 1, 4, 4>}, {transform_indices = @transform_2, window_bounds = array<i64: 1, 1, 4, 1>}]} {
    %c0_i32 = arith.constant 0 : i32
    %0 = arith.cmpi eq, %arg2, %c0_i32 : i32
    %1 = arith.extui %0 : i1 to i32
    %c0_i32_0 = arith.constant 0 : i32
    %2 = arith.cmpi ne, %1, %c0_i32_0 : i32
    scf.if %2 {
      %cst_20 = arith.constant 0.000000e+00 : f32
      %17 = vector.broadcast %cst_20 : f32 to vector<1x1x4x4xf32>
      %c0_21 = arith.constant 0 : index
      %c0_22 = arith.constant 0 : index
      %c0_23 = arith.constant 0 : index
      %c0_24 = arith.constant 0 : index
      %18 = vector.load %arg4[%c0_21, %c0_22, %c0_23, %c0_24] : memref<1x1x4x4xf32, #tpu.memory_space<vmem>>, vector<1x1x4x4xf32>
      tpu.vector_store %arg4[%c0_21, %c0_22, %c0_23, %c0_24], %17 {strides = array<i32>} : memref<1x1x4x4xf32, #tpu.memory_space<vmem>>, vector<1x1x4x4xf32>,
      %cst_25 = arith.constant 0.000000e+00 : f32
      %19 = vector.broadcast %cst_25 : f32 to vector<1x1x4x1xf32>
      %c0_26 = arith.constant 0 : index
      %c0_27 = arith.constant 0 : index
      %c0_28 = arith.constant 0 : index
      %c0_29 = arith.constant 0 : index
      %20 = vector.load %arg5[%c0_26, %c0_27, %c0_28, %c0_29] : memref<1x1x4x1xf32, #tpu.memory_space<vmem>>, vector<1x1x4x1xf32>
      tpu.vector_store %arg5[%c0_26, %c0_27, %c0_28, %c0_29], %19 {strides = array<i32>} : memref<1x1x4x1xf32, #tpu.memory_space<vmem>>, vector<1x1x4x1xf32>,
    } else {
    }
    %c0 = arith.constant 0 : index
    %c0_1 = arith.constant 0 : index
    %c0_2 = arith.constant 0 : index
    %3 = vector.load %arg3[%c0, %c0_1, %c0_2] : memref<1x4x256xbf16, #tpu.memory_space<vmem>>, vector<1x4x256xbf16>
    %4 = vector.shape_cast %3 : vector<1x4x256xbf16> to vector<4x256xbf16>
    %cst = arith.constant dense<0.000000e+00> : vector<4x4xf32>
    %5 = tpu.matmul %4, %4, %cst {dimension_numbers = #tpu.dot_dimension_numbers<[1], [1], [0], [0], [0, 0, 1, 0], [], []>} : vector<4x256xbf16>, vector<4x256xbf16>, vector<4x4xf32> -> vector<4x4xf32>
    %6 = arith.extf %4 : vector<4x256xbf16> to vector<4x256xf32>
    %cst_3 = arith.constant dense<0.000000e+00> : vector<4xf32>
    %7 = vector.multi_reduction <add>, %6, %cst_3 [1] : vector<4x256xf32> to vector<4xf32>
    %8 = vector.shape_cast %7 : vector<4xf32> to vector<4x1xf32>
    %c0_4 = arith.constant 0 : index
    %c0_5 = arith.constant 0 : index
    %c0_6 = arith.constant 0 : index
    %c0_7 = arith.constant 0 : index
    %9 = vector.load %arg4[%c0_4, %c0_5, %c0_6, %c0_7] : memref<1x1x4x4xf32, #tpu.memory_space<vmem>>, vector<1x1x4x4xf32>
    %10 = vector.shape_cast %5 : vector<4x4xf32> to vector<1x1x4x4xf32>
    %11 = arith.addf %9, %10 : vector<1x1x4x4xf32>
    %c0_8 = arith.constant 0 : index
    %c0_9 = arith.constant 0 : index
    %c0_10 = arith.constant 0 : index
    %c0_11 = arith.constant 0 : index
    %12 = vector.load %arg4[%c0_8, %c0_9, %c0_10, %c0_11] : memref<1x1x4x4xf32, #tpu.memory_space<vmem>>, vector<1x1x4x4xf32>
    tpu.vector_store %arg4[%c0_8, %c0_9, %c0_10, %c0_11], %11 {strides = array<i32>} : memref<1x1x4x4xf32, #tpu.memory_space<vmem>>, vector<1x1x4x4xf32>,
    %c0_12 = arith.constant 0 : index
    %c0_13 = arith.constant 0 : index
    %c0_14 = arith.constant 0 : index
    %c0_15 = arith.constant 0 : index
    %13 = vector.load %arg5[%c0_12, %c0_13, %c0_14, %c0_15] : memref<1x1x4x1xf32, #tpu.memory_space<vmem>>, vector<1x1x4x1xf32>
    %14 = vector.shape_cast %8 : vector<4x1xf32> to vector<1x1x4x1xf32>
    %15 = arith.addf %13, %14 : vector<1x1x4x1xf32>
    %c0_16 = arith.constant 0 : index
    %c0_17 = arith.constant 0 : index
    %c0_18 = arith.constant 0 : index
    %c0_19 = arith.constant 0 : index
    %16 = vector.load %arg5[%c0_16, %c0_17, %c0_18, %c0_19] : memref<1x1x4x1xf32, #tpu.memory_space<vmem>>, vector<1x1x4x1xf32>
    tpu.vector_store %arg5[%c0_16, %c0_17, %c0_18, %c0_19], %15 {strides = array<i32>} : memref<1x1x4x1xf32, #tpu.memory_space<vmem>>, vector<1x1x4x1xf32>,
    return
  }
  func.func @transform_0(%arg0: i32, %arg1: i32, %arg2: i32) -> (i32, i32, i32) {
    %c1_i32 = arith.constant 1 : i32
    %0 = arith.muli %arg1, %c1_i32 : i32
    %1 = arith.addi %0, %arg2 : i32
    %c0_i32 = arith.constant 0 : i32
    %c0_i32_0 = arith.constant 0 : i32
    return %arg0, %c0_i32, %1 : i32, i32, i32
  }
  func.func @transform_1(%arg0: i32, %arg1: i32, %arg2: i32) -> (i32, i32, i32, i32) {
    %c0_i32 = arith.constant 0 : i32
    %c0_i32_0 = arith.constant 0 : i32
    %c0_i32_1 = arith.constant 0 : i32
    return %arg0, %arg1, %c0_i32, %c0_i32_0 : i32, i32, i32, i32
  }
  func.func @transform_2(%arg0: i32, %arg1: i32, %arg2: i32) -> (i32, i32, i32, i32) {
    %c0_i32 = arith.constant 0 : i32
    %c0_i32_0 = arith.constant 0 : i32
    %c0_i32_1 = arith.constant 0 : i32
    return %arg0, %arg1, %c0_i32, %c0_i32_0 : i32, i32, i32, i32
  }
}

</mosaic_0001>

<bundles_post_ra>
// kernel: tpu_custom_call.1
= control target key start
LH: loop header
LB: loop body
LE: loop exit
PB: predicated region body
PF: predicated region fallthrough
CT: control target
= control target key end

     0   :  { %8 = vsyncpa [#allocation3], 0  ;;  %s798_s0 = inlined_call_operand.hbm [shape: bf16[2,4,256], index: 0, kind: input, shape index: {}]   ;;  %s799_s1 = inlined_call_operand.hbm [shape: f32[2,1,4,4], index: 1, kind: output, shape index: {0}]   ;;  %s800_s2 = inlined_call_operand.vmem [shape: f32[2,1,4,1], index: 2, kind: output, shape index: {1}]  }
   0x1   :  { %10 = vsyncpa [#allocation3 + $0x1], 0 }
   0x2   :  { %11 = vsyncpa [#allocation4], 0 }
   0x3   :  { %13 = vsyncpa [#allocation4 + $0x1], 0  ;;  %s639_s9 = smov 0   ;;  %s641_s10 = smov 0  }
   0x4   :  { %s643_s11 = smov 0   ;;  %s645_s12 = smov 0  }
   0x5   :  { %s647_s13 = smov 0   ;;  %s649_s14 = smov 0  }
   0x6 LB: > { %s430_s15 = sadd.s32 4294967295, %s618_s14   ;;  %s431_s16 = sadd.s32 4294967294, %s618_s14   ;;  %s618_s14 = sphi %s649_s14, %s19_s14   ;;  %s614_s13 = sphi %s647_s13, %s812_s13   ;;  %s610_s12 = sphi %s645_s12, %s811_s12   ;;  %s606_s11 = sphi %s643_s11, %s810_s11   ;;  %s602_s10 = sphi %s641_s10, %s809_s10   ;;  %s598_s9 = sphi %s639_s9, %s808_s9  }
   0x7   : > { %s38_s17 = sadd.s32 1, %s614_s13  ;;  %s49_s18 = sadd.s32 1, %s606_s11 }
   0x8   : > { %p40_p0 = scmp.ge.s32.totalorder %s38_s17, 2  ;;  %p56_p1 = scmp.ne.s32.totalorder %s606_s11, %s602_s10 }
   0x9   : > { %p57_p2 = scmp.eq.s32.totalorder %s618_s14, 0  ;;  %p62_p3 = scmp.ne.s32.totalorder %s602_s10, %s598_s9 }
   0xa   : > { %s814_s17 = smov (%p40_p0, %s38_s17), 0  ;;  %p63_p5 = scmp.eq.s32.totalorder %s430_s15, 0 }
   0xb   : > { %p680_p4 = por %p57_p2, %p56_p1  ;;  %s44_s20 = ssub.s32 %s614_s13, %s814_s17 }
   0xc   : > { %p88_p6 = scmp.eq.s32.totalorder %s430_s15, 1  ;;  %p47_p7 = scmp.eq.s32.totalorder %s44_s20, 0 }
   0xd   : > { %p686_p8 = por %p63_p5, %p62_p3  ;;  %p94_p10 = scmp.eq.s32.totalorder %s431_s16, 1 }
   0xe   : > { %p690_p9 = por %p88_p6, %p56_p1  ;;  %p458_p13 = scmp.lt.s32.totalorder %s618_s14, 2 }
   0xf   : > { %s695_s23 = scalar_select %p47_p7, %s606_s11, %s49_s18  }
  0x10   : > { %p697_p11 = por %p94_p10, %p62_p3  ;;  %s142_s25 = sand.u32 1, %s606_s11  }
  0x11   : > { %s434_s26 = sshll.u32 %s142_s25, 2  ;;  %s445_s27 = sshll.u32 %s614_s13, 6 }
  0x12   : > { %s804_s24 = scalar_select %p697_p11, 1, 0 }
  0x13   : > { %s155_s30 = scalar_lea.hbm %s798_s0, %s445_s27  ;;  %s146_s3 = scalar_lea.vmem [#allocation2], %s434_s26 }
  0x14   : > { %s157_s4 = sshll.u32 %s146_s3, 4  ;;  %p710_p0 = pnand %p458_p13, %p680_p4  ;;  %s158_s4 = int_to_ptr.vmem [resolvable:$true] %s157_s4 }
  0x15   : > { %p437_p1 = scmp.ge.s32.totalorder %s618_s14, 1  ;;  %p162_p2 = scmp.lt.s32.totalorder %s618_s14, 3 }
  0x16   : > { %s143_s6 = scalar_lea.sflag [#allocation3], %s142_s25  ;;  %p512_p3 = pneg %p710_p0 }
  0x17   : > { %s523_s7 = scalar_lea.vmem %s158_s4, 64  ;;  %s620_s8 = smov [#allocation2]  }
  0x18   : > { %p524_p5 = scmp.ne.s32.totalorder %s158_s4, %s523_s7  ;;  %s528_s15 = sshll.u32 %s620_s8, 4  ;;  %s529_s15 = int_to_ptr.vmem [resolvable:$false] %s528_s15 }
  0x19   : > { %s530_s16 = scalar_lea.vmem %s529_s15, 128  ;;  %p531_p10 = scmp.lt.s32.totalorder %s158_s4, %s529_s15 }
  0x1a   : > { %p526_p6 = pnand %p524_p5, %p512_p3  ;;  %p532_p12 = scmp.lt.s32.totalorder %s530_s16, %s523_s7 }
  0x1c   : > { %p527_p7 = pneg %p526_p6  ;;  %p533_p4 = por %p532_p12, %p531_p10 }
  0x1e   : > { %p534_p13 = pnand %p533_p4, %p527_p7 }
  0x20   : > { %537 = shalt.err (!%p534_p13)
}
  0x21   : > { %453 = dma.hbm_to_vmem [thread:$0]  (!%p710_p0), %s155_s30, 64, %s158_s4, %s143_s6  }
  0x22   : > { %p163_p11 = pnand %p437_p1, %p162_p2 }
  0x23   : > { %s725_s18 = sand.u32 (!%p163_p11), 1, %s602_s10  }
  0x24   : > { %166 = sbr.rel (%p163_p11) target bundleno = 270 (0x10e), region = 24  ;;  %s438_s19 = sshll.u32 (!%p163_p11), %s725_s18, 2 }
  0x25   : > { %s169_s20 = scalar_lea.sflag (!%p163_p11), [#allocation3], %s725_s18  ;;  %s172_s25 = scalar_lea.vmem (!%p163_p11), [#allocation2], %s438_s19 }
  0x29   : > { %589 = dma.done.wait (%p686_p8), %s169_s20, 64  }
  0x2a   : > { %591 = vsyncadd (%p686_p8), %s169_s20, 4294967232  ;;  %v223_v0 = vlaneseq  ;;  %vm214_vm0 = vcmask 27648   ;;  %v621_v1 = vmov 1983009808   ;;  %s733_s26 = scalar_lea.vmem [#allocation5], %s438_s19  ;;  %v622_v4 = vmov 0.0  }
  0x2b   : > { %v221_v2 = vunpack.c.l.s4 %v621_v1  ;;  %215 = vst.msk [vmem:[%s733_s26] sm:$0xf] %vm214_vm0, %v622_v4  ;;  %v218_v7 = vld [vmem:[%s172_s25] sm:$0xf]  ;;  %vm274_vm1 = vcmask 1043456   ;;  %p202_p8 = scmp.lt.s32.totalorder %s610_s12, 1 }
  0x2c   : > { %v224_v3 = vshrl.u32 %v223_v0, 7  ;;  %v270_v9 = vunpack.c.l.bf16 %v218_v7  ;;  %vm216_vm2 = vcmask 3072   ;;  %s442_s3 = sshll.u32 %s610_s12, 6  ;;  %s310_s4 = sshll.u32 %s733_s26, 4  ;;  %s750_s4 = int_to_ptr.vmem [resolvable:$true] %s310_s4 }
  0x2d   : > { %v222_v5 = vunpack.c.0.s8 %v221_v2  ;;  %s203_s21 = scalar_select %p202_p8, %s610_s12, 1 }
  0x2e   : > { %v272_v11 = vcombine.high %v270_v9, %v270_v9  ;;  %v275_v12 = vsel %vm274_vm1, %v270_v9, 0.0  ;;  %s748_s7 = scalar_lea.hbm %s799_s1, %s442_s3  ;;  %s289_s8 = scalar_lea.sflag [#allocation4], %s725_s18 }
  0x2f   : > { %v225_v6 = vsub.s32 %v222_v5, %v224_v3  ;;  %s440_s27 = sshll.u32 %s203_s21, 2  ;;  %s538_s15 = scalar_lea.vmem %s750_s4, 64 }
  0x30   : > { %v276_v13 = vsel %vm274_vm1, %v272_v11, 0.0  ;;  %s208_s30 = scalar_lea.vmem %s800_s2, %s440_s27  ;;  %p539_p11 = scmp.ne.s32.totalorder %s750_s4, %s538_s15 }
  0x31   : > { %v226_v8 = vrot.slane %v218_v7, %v225_v6  ;;  %v277_v14 = vadd.f32 %v276_v13, %v275_v12  ;;  %217 = vst.msk [vmem:[%s208_s30] sm:$0xf] %vm216_vm2, %v622_v4  ;;  %s623_s12 = smov [#allocation5]  }
  0x32   : > { %v280_v18 = vld [vmem:[%s733_s26] sm:$0xf]  ;;  %p540_p12 = pnand %p539_p11, %p690_p9  ;;  %s542_s16 = sshll.u32 %s623_s12, 4  ;;  %s543_s16 = int_to_ptr.vmem [resolvable:$false] %s542_s16 }
  0x33   : > { %v227_v10 = vcombine.high %v226_v8, %v226_v8  ;;  %278 = vadd.xlane.f32.xlu0 %v277_v14  ;;  %s544_s19 = scalar_lea.vmem %s543_s16, 128  ;;  %p545_p1 = scmp.lt.s32.totalorder %s750_s4, %s543_s16 }
  0x34   : > { %p541_p0 = pneg %p540_p12  ;;  %p546_p2 = scmp.lt.s32.totalorder %s544_s19, %s538_s15 }
  0x35   : > { %244 = vmatprep.subr.bf16.mxu0 %v227_v10  ;;  %262 = vmatprep.mubr.bf16.mxu0 %v227_v10 }
  0x36   : > { %245 = vmatpush1.bf16.xpose.msra.mxu0 %v226_v8  ;;  %p547_p3 = por %p546_p2, %p545_p1 }
  0x38   : > { %v284_v15 = vld [vmem:[%s208_s30] sm:$0xf]  ;;  %p548_p5 = pnand %p547_p3, %p541_p0 }
  0x3d   : > { %263 = vmatmul.mubr.bf16.vlgmr.msra.gmra.mxu0 %v226_v8 }
  0xbc   : > { %v279_v16 = vpop.xlane.xlu0 %278 }
  0xbd   : > { %v285_v17 = vadd.f32 %v284_v15, %v279_v16 }
  0xbf   : > { %287 = vst.msk [vmem:[%s208_s30] sm:$0xf] %vm216_vm2, %v285_v17 }
  0xfd   : > { %v264_v19 = vpop.f32.mrf.mxu0 }
  0xfe   : > { %v281_v20 = vadd.f32 %v280_v18, %v264_v19 }
  0xff   : > { %v266_v21 = vpop.f32.mrf.mxu0 }
 0x100   : > { %283 = vst.msk [vmem:[%s733_s26] sm:$0xf] %vm214_vm0, %v281_v20 }
 0x101   : > { %v267_v22 = vpop.f32.mrf.mxu0 }
 0x102   : > { %551 = shalt.err (!%p548_p5)
}
 0x103   : > { %s552_s20 = scalar_lea.hbm %s748_s7, 64  ;;  %s556_s26 = scalar_lea.hbm %s799_s1, 128 }
 0x104   : > { %p553_p6 = scmp.ne.s32.totalorder %s748_s7, %s552_s20  ;;  %p557_p4 = scmp.lt.s32.totalorder %s748_s7, %s799_s1 }
 0x105   : > { %p558_p13 = scmp.lt.s32.totalorder %s556_s26, %s552_s20 }
 0x106   : > { %p554_p7 = pnand %p553_p6, %p690_p9 }
 0x107   : > { %p559_p8 = por %p558_p13, %p557_p4 }
 0x108   : > { %p555_p10 = pneg %p554_p7 }
 0x10a   : > { %p560_p11 = pnand %p559_p8, %p555_p10 }
 0x10c   : > { %563 = shalt.err (!%p560_p11)
}
 0x10d   : > { %448 = dma.vmem_to_hbm [thread:$0]  (%p690_p9), %s750_s4, 64, %s748_s7, %s289_s8   ;;  %v268_v23 = vpop.f32.mrf.mxu0 }
 0x10e PF: > { %s325_s28 = sand.u32 1, %s598_s9   ;;  %p806_p12 = scmp.ne.s32.totalorder %s804_s24, 0 }
 0x10f   : > { %p807_p0 = scmp.ge.s32.totalorder %s618_s14, 2  ;;  %s326_s29 = scalar_lea.sflag [#allocation4], %s325_s28 }
 0x111   : > { %p455_p1 = pnand %p807_p0, %p806_p12 }
 0x113   : > { %p456_p2 = pneg %p455_p1 }
 0x115   : > { %593 = dma.done.wait (%p456_p2), %s326_s29, 64  }
 0x116   : > { %595 = vsyncadd (%p456_p2), %s326_s29, 4294967232  ;;  %s19_s14 = sadd.s32 1, %s618_s14   ;;  %s808_s9 = smov %s602_s10 }
 0x117   : > { %p16_p3 = scmp.ge.s32.totalorder %s19_s14, 4   ;;  %s809_s10 = smov %s606_s11 }
 0x118   : > { %s810_s11 = smov %s695_s23  ;;  %s811_s12 = smov %s614_s13 }
 0x119   : > { %s812_s13 = smov %s814_s17  ;;  %18 = sbr.rel (!%p16_p3) target bundleno = 6 (0x6), region = 85 }
 0x11e   :  { %341 = vsyncpa [#allocation3], 1 }
 0x11f   :  { %343 = vsyncpa [#allocation3 + $0x1], 1 }
 0x120   :  { %344 = vsyncpa [#allocation4], 1 }
 0x121   :  { %346 = vsyncpa [#allocation4 + $0x1], 1 }

</bundles_post_ra>
